<compile_context>
chip_gen: v7x
topology: tpu7x:2x2x1
jax: 0.10.0
libtpu: 0.0.40
codegen_flags: <defaults>
</compile_context>

<pallas_src>
import functools

import jax
import jax.numpy as jnp
from jax import lax
from jax.experimental import pallas as pl
from jax.experimental.pallas import tpu as pltpu


# ---------------------------------------------------------------------------
# Fused Encoder kernel (one batch-block per grid step, everything in VMEM)
# ---------------------------------------------------------------------------
def _encoder_kernel(feat_ref, wc_ref, wm_loc_t_ref, emb_wm_ref, bm_ref,
                    wg_t_ref, out_ref, *, nodes):
    bbn = feat_ref.shape[0]               # (batch_block * nodes) rows
    bb = bbn // nodes                      # rallies in this block
    p, h = emb_wm_ref.shape                # player_num, hidden
    num_layer = wg_t_ref.shape[0]

    feat = feat_ref[...]                   # (bbn, 3) = [x, y, player_id]
    cx = feat[:, 0:1]
    cy = feat[:, 1:2]
    pid = feat[:, 2:3].astype(jnp.int32)

    # --- coordination_transform: Linear(2, loc_dim) + bias, then ReLU -------
    # rank-2 contraction expressed as broadcast mul-adds (no tiny-K matmul)
    wcx = wc_ref[0:1, :]
    wcy = wc_ref[1:2, :]
    bc = wc_ref[2:3, :]
    loc = jnp.maximum(cx * wcx + cy * wcy + bc, 0.0)        # (bbn, loc_dim)

    # --- player embedding folded into model_input weight --------------------
    # onehot @ (emb @ Wm_emb^T): one MXU pass instead of gather + two matmuls.
    onehot = (pid == lax.broadcasted_iota(jnp.int32, (bbn, p), 1)
              ).astype(jnp.float32)                          # (bbn, P)

    # --- model_input_linear (concat folded into a split matmul) -------------
    x = (jnp.dot(loc, wm_loc_t_ref[...], preferred_element_type=jnp.float32)
         + jnp.dot(onehot, emb_wm_ref[...], preferred_element_type=jnp.float32)
         + bm_ref[...])                                      # (bbn, H)

    # --- GCN propagation with analytic A_norm = ones / N ---------------------
    # A = ones - eye  =>  A_hat = ones, D = N, A_norm = ones/N, so
    # A_norm @ X is the per-rally mean over nodes; after it all node rows are
    # identical, so every later propagation is the identity.
    xm = jnp.mean(x.reshape(bb, nodes, h), axis=1)           # (bb, H)

    for i in range(num_layer):
        y = jnp.dot(xm, wg_t_ref[i], preferred_element_type=jnp.float32)
        xm = jax.nn.sigmoid(y) if i == num_layer - 1 else jnp.maximum(y, 0.0)
        # Dropout(0.1) is identity at inference -> omitted.

    # lane-dense store: (bb, N*H) with identical per-node rows laid out along
    # the lane axis; wrapper reshapes back to (bb, N, H).
    out_ref[...] = jnp.concatenate([xm] * nodes, axis=-1)    # (bb, N*H)


def _pick_batch_block(batch):
    # Either the whole batch (grid of 1) or blocks of 8 rallies; both keep the
    # second-to-last output block dim valid w.r.t. the (8, 128) rule.
    if batch <= 8 or batch % 8 != 0:
        return batch
    return 8


# ---------------------------------------------------------------------------
# Python wrapper: trace-level input/weight plumbing + single pallas_call
# ---------------------------------------------------------------------------
@functools.partial(jax.jit, static_argnames=("encode_length",))
def encoder_forward(params, player, shot_type, player_A_x, player_A_y,
                    player_B_x, player_B_y, encode_length):
    del shot_type  # only used for .device placement in the torch reference
    batch = player.shape[0]
    length = int(encode_length)
    nodes = 2 * length
    bn = batch * nodes

    loc_dim = params["wc"].shape[0]
    hidden = params["wm"].shape[0]

    # raw adjacency (ones - eye, tiled) is what the module returns; it is a
    # trace-level constant and is NOT fed to the kernel anymore.
    adj = jnp.tile((jnp.ones((nodes, nodes), jnp.float32)
                    - jnp.eye(nodes, dtype=jnp.float32))[None], (batch, 1, 1))

    # interleaved node coordinates: [A_t0, B_t0, A_t1, B_t1, ...]
    p_a = jnp.stack([player_A_x, player_A_y], axis=-1)       # (B, L, 2)
    p_b = jnp.stack([player_B_x, player_B_y], axis=-1)       # (B, L, 2)
    coord = jnp.stack([p_a, p_b], axis=2).reshape(batch, nodes, 2)
    coord = coord.astype(jnp.float32)

    # player ids per node: player.repeat([1, encode_length]) -> [pA, pB, ...]
    pid = jnp.tile(player.astype(jnp.int32), (1, length)).reshape(batch, nodes)

    # packed per-node features: [x, y, player_id]  (one input instead of three)
    feat = jnp.concatenate(
        [coord.reshape(bn, 2), pid.reshape(bn, 1).astype(jnp.float32)], axis=1)

    # packed coordinate-transform parameters: rows = [w_x, w_y, bias]
    wc = params["wc"]                                        # (loc_dim, 2)
    wc_pack = jnp.stack([wc[:, 0], wc[:, 1], params["bc"]], axis=0)  # (3, loc)

    # model_input weights: split + pre-transposed; embedding table folded in.
    wm_t = params["wm"].T                                    # (loc+pd, hidden)
    wm_loc_t = wm_t[:loc_dim]                                # (loc, hidden)
    emb_wm = params["emb"].astype(jnp.float32) @ wm_t[loc_dim:]  # (P, hidden)
    bm = params["bm"].reshape(1, hidden)
    wg_t = jnp.transpose(params["wg"], (0, 2, 1))            # (L, H, H)

    num_layer = wg_t.shape[0]
    player_num = emb_wm.shape[0]

    bb = _pick_batch_block(batch)
    grid = (batch // bb,)

    out_flat = pl.pallas_call(
        functools.partial(_encoder_kernel, nodes=nodes),
        out_shape=jax.ShapeDtypeStruct((batch, nodes * hidden), jnp.float32),
        grid=grid,
        in_specs=[
            pl.BlockSpec((bb * nodes, 3), lambda i: (i, 0)),
            pl.BlockSpec((3, loc_dim), lambda i: (0, 0)),
            pl.BlockSpec((loc_dim, hidden), lambda i: (0, 0)),
            pl.BlockSpec((player_num, hidden), lambda i: (0, 0)),
            pl.BlockSpec((1, hidden), lambda i: (0, 0)),
            pl.BlockSpec((num_layer, hidden, hidden), lambda i: (0, 0, 0)),
        ],
        out_specs=pl.BlockSpec((bb, nodes * hidden), lambda i: (i, 0)),
        compiler_params=pltpu.CompilerParams(
            dimension_semantics=("parallel",)),
    )(feat, wc_pack, wm_loc_t, emb_wm, bm, wg_t)

    node_embedding = out_flat.reshape(batch, nodes, hidden)
    return node_embedding, adj


# ---------------------------------------------------------------------------
# Pure-JAX reference (op-for-op faithful to the PyTorch module)
# ---------------------------------------------------------------------------
def encoder_reference(params, player, player_A_x, player_A_y,
                      player_B_x, player_B_y, encode_length):
    batch = player.shape[0]
    nodes = 2 * encode_length
    adj = jnp.tile((jnp.ones((nodes, nodes), jnp.float32)
                    - jnp.eye(nodes, dtype=jnp.float32))[None], (batch, 1, 1))

    p_a = jnp.stack([player_A_x, player_A_y], axis=-1)
    p_b = jnp.stack([player_B_x, player_B_y], axis=-1)
    coord = jnp.stack([p_a, p_b], axis=2).reshape(batch, nodes, 2).astype(jnp.float32)

    ct = jax.nn.relu(coord @ params["wc"].T + params["bc"])
    pid = jnp.tile(player.astype(jnp.int32), (1, encode_length))
    pemb = params["emb"][pid]
    rally = jnp.concatenate([ct, pemb], axis=-1)
    x = rally @ params["wm"].T + params["bm"]

    # preprocess_adj
    a_hat = adj + jnp.eye(nodes, dtype=jnp.float32)[None]
    d = jnp.sum(a_hat, axis=2)
    d_inv_sqrt = jnp.power(d, -0.5)
    d_inv_sqrt = jnp.where(jnp.isinf(d_inv_sqrt), 0.0, d_inv_sqrt)
    d_mat = d_inv_sqrt[..., None] * jnp.eye(nodes, dtype=jnp.float32)[None]
    a_norm = d_mat @ a_hat @ d_mat

    num_layer = params["wg"].shape[0]
    for i in range(num_layer):
        x = a_norm @ x
        x = x @ params["wg"][i].T
        x = jax.nn.sigmoid(x) if i == num_layer - 1 else jax.nn.relu(x)
    return x, adj


def init_params(key, player_num, player_dim, location_dim, hidden_size, num_layer):
    ks = jax.random.split(key, 6)

    def uniform(k, shape, fan_in):
        b = 1.0 / (fan_in ** 0.5)
        return jax.random.uniform(k, shape, jnp.float32, minval=-b, maxval=b)

    in_dim = player_dim + location_dim
    return {
        "emb": jax.random.normal(ks[0], (player_num, player_dim), jnp.float32),
        "wc": uniform(ks[1], (location_dim, 2), 2),
        "bc": uniform(ks[2], (location_dim,), 2),
        "wm": uniform(ks[3], (hidden_size, in_dim), in_dim),
        "bm": uniform(ks[4], (hidden_size,), in_dim),
        "wg": uniform(ks[5], (num_layer, hidden_size, hidden_size), hidden_size),
    }


if __name__ == "__main__":
    BATCH = 2
    ENCODE_LENGTH = 8          # -> 16 graph nodes per rally
    PLAYER_NUM = 8
    PLAYER_DIM = 16
    LOCATION_DIM = 16
    HIDDEN_SIZE = 32
    NUM_LAYER = 2

    key = jax.random.PRNGKey(0)
    keys = jax.random.split(key, 6)

    player = jax.random.randint(keys[0], (BATCH, 2), 0, PLAYER_NUM)
    shot_type = jnp.zeros((BATCH, ENCODE_LENGTH), jnp.int32)   # unused numerically
    player_A_x = jax.random.uniform(keys[1], (BATCH, ENCODE_LENGTH), jnp.float32)
    player_A_y = jax.random.uniform(keys[2], (BATCH, ENCODE_LENGTH), jnp.float32)
    player_B_x = jax.random.uniform(keys[3], (BATCH, ENCODE_LENGTH), jnp.float32)
    player_B_y = jax.random.uniform(keys[4], (BATCH, ENCODE_LENGTH), jnp.float32)

    params = init_params(keys[5], PLAYER_NUM, PLAYER_DIM, LOCATION_DIM,
                         HIDDEN_SIZE, NUM_LAYER)

    node_emb, adj = encoder_forward(params, player, shot_type,
                                    player_A_x, player_A_y,
                                    player_B_x, player_B_y, ENCODE_LENGTH)
    node_emb = jax.block_until_ready(node_emb)
    assert node_emb.shape == (BATCH, 2 * ENCODE_LENGTH, HIDDEN_SIZE)
    assert adj.shape == (BATCH, 2 * ENCODE_LENGTH, 2 * ENCODE_LENGTH)

    ref_emb, ref_adj = encoder_reference(params, player,
                                         player_A_x, player_A_y,
                                         player_B_x, player_B_y, ENCODE_LENGTH)
    assert jnp.allclose(adj, ref_adj)
    assert jnp.allclose(node_emb, ref_emb, atol=1e-3, rtol=1e-3)

    print("KERNEL_OK")
</pallas_src>

<mosaic_0001>
module attributes {stable_mosaic.version = 11 : i64} {
  func.func @_encoder_kernel(%arg0: i32, %arg1: memref<32x3xf32, #tpu.memory_space<vmem>>, %arg2: memref<3x16xf32, #tpu.memory_space<vmem>>, %arg3: memref<16x32xf32, #tpu.memory_space<vmem>>, %arg4: memref<8x32xf32, #tpu.memory_space<vmem>>, %arg5: memref<1x32xf32, #tpu.memory_space<vmem>>, %arg6: memref<2x32x32xf32, #tpu.memory_space<vmem>>, %arg7: memref<2x512xf32, #tpu.memory_space<vmem>>) attributes {dimension_semantics = [#tpu.dimension_semantics<parallel>], iteration_bounds = array<i64: 1>, scalar_prefetch = 0 : i64, scratch_operands = 0 : i64, tpu.core_type = #tpu.core_type<tc>, window_params = [{transform_indices = @transform_0, window_bounds = array<i64: 32, 3>}, {pipeline_mode = #tpu.pipeline_mode<synchronous>, transform_indices = @transform_1, window_bounds = array<i64: 3, 16>}, {pipeline_mode = #tpu.pipeline_mode<synchronous>, transform_indices = @transform_2, window_bounds = array<i64: 16, 32>}, {pipeline_mode = #tpu.pipeline_mode<synchronous>, transform_indices = @transform_3, window_bounds = array<i64: 8, 32>}, {pipeline_mode = #tpu.pipeline_mode<synchronous>, transform_indices = @transform_4, window_bounds = array<i64: 1, 32>}, {pipeline_mode = #tpu.pipeline_mode<synchronous>, transform_indices = @transform_5, window_bounds = array<i64: 2, 32, 32>}, {transform_indices = @transform_6, window_bounds = array<i64: 2, 512>}]} {
    %c0 = arith.constant 0 : index
    %c0_0 = arith.constant 0 : index
    %0 = vector.load %arg1[%c0, %c0_0] : memref<32x3xf32, #tpu.memory_space<vmem>>, vector<32x3xf32>
    %1 = vector.extract_strided_slice %0 {offsets = [0, 0], sizes = [32, 1], strides = [1, 1]} : vector<32x3xf32> to vector<32x1xf32>
    %2 = vector.extract_strided_slice %0 {offsets = [0, 1], sizes = [32, 1], strides = [1, 1]} : vector<32x3xf32> to vector<32x1xf32>
    %3 = vector.extract_strided_slice %0 {offsets = [0, 2], sizes = [32, 1], strides = [1, 1]} : vector<32x3xf32> to vector<32x1xf32>
    %4 = arith.fptosi %3 : vector<32x1xf32> to vector<32x1xi32>
    %c0_1 = arith.constant 0 : index
    %c0_2 = arith.constant 0 : index
    %5 = vector.load %arg2[%c0_1, %c0_2] : memref<3x16xf32, #tpu.memory_space<vmem>>, vector<1x16xf32>
    %c1 = arith.constant 1 : index
    %c0_3 = arith.constant 0 : index
    %6 = vector.load %arg2[%c1, %c0_3] : memref<3x16xf32, #tpu.memory_space<vmem>>, vector<1x16xf32>
    %c2 = arith.constant 2 : index
    %c0_4 = arith.constant 0 : index
    %7 = vector.load %arg2[%c2, %c0_4] : memref<3x16xf32, #tpu.memory_space<vmem>>, vector<1x16xf32>
    %8 = vector.broadcast %1 : vector<32x1xf32> to vector<32x16xf32>
    %9 = vector.broadcast %5 : vector<1x16xf32> to vector<32x16xf32>
    %10 = arith.mulf %8, %9 : vector<32x16xf32>
    %11 = vector.broadcast %2 : vector<32x1xf32> to vector<32x16xf32>
    %12 = vector.broadcast %6 : vector<1x16xf32> to vector<32x16xf32>
    %13 = arith.mulf %11, %12 : vector<32x16xf32>
    %14 = arith.addf %10, %13 : vector<32x16xf32>
    %15 = vector.broadcast %7 : vector<1x16xf32> to vector<32x16xf32>
    %16 = arith.addf %14, %15 : vector<32x16xf32>
    %cst = arith.constant 0.000000e+00 : f32
    %17 = vector.broadcast %cst : f32 to vector<32x16xf32>
    %18 = arith.maximumf %16, %17 : vector<32x16xf32>
    %19 = tpu.iota {dimensions = array<i32: 1>} : vector<32x8xi32>
    %20 = vector.broadcast %4 : vector<32x1xi32> to vector<32x8xi32>
    %21 = arith.cmpi eq, %20, %19 : vector<32x8xi32>
    %22 = arith.extui %21 : vector<32x8xi1> to vector<32x8xi32>
    %23 = arith.sitofp %22 : vector<32x8xi32> to vector<32x8xf32>
    %c0_5 = arith.constant 0 : index
    %c0_6 = arith.constant 0 : index
    %24 = vector.load %arg3[%c0_5, %c0_6] : memref<16x32xf32, #tpu.memory_space<vmem>>, vector<16x32xf32>
    %cst_7 = arith.constant dense<0.000000e+00> : vector<32x32xf32>
    %25 = tpu.matmul %18, %24, %cst_7 {dimension_numbers = #tpu.dot_dimension_numbers<[1], [0], [0], [1], [0, 0, 1, 1], [], []>} : vector<32x16xf32>, vector<16x32xf32>, vector<32x32xf32> -> vector<32x32xf32>
    %c0_8 = arith.constant 0 : index
    %c0_9 = arith.constant 0 : index
    %26 = vector.load %arg4[%c0_8, %c0_9] : memref<8x32xf32, #tpu.memory_space<vmem>>, vector<8x32xf32>
    %cst_10 = arith.constant dense<0.000000e+00> : vector<32x32xf32>
    %27 = tpu.matmul %23, %26, %cst_10 {dimension_numbers = #tpu.dot_dimension_numbers<[1], [0], [0], [1], [0, 0, 1, 1], [], []>} : vector<32x8xf32>, vector<8x32xf32>, vector<32x32xf32> -> vector<32x32xf32>
    %28 = arith.addf %25, %27 : vector<32x32xf32>
    %c0_11 = arith.constant 0 : index
    %c0_12 = arith.constant 0 : index
    %29 = vector.load %arg5[%c0_11, %c0_12] : memref<1x32xf32, #tpu.memory_space<vmem>>, vector<1x32xf32>
    %30 = vector.broadcast %29 : vector<1x32xf32> to vector<32x32xf32>
    %31 = arith.addf %28, %30 : vector<32x32xf32>
    %32 = vector.shape_cast %31 : vector<32x32xf32> to vector<2x16x32xf32>
    %cst_13 = arith.constant dense<0.000000e+00> : vector<2x32xf32>
    %33 = vector.multi_reduction <add>, %32, %cst_13 [1] : vector<2x16x32xf32> to vector<2x32xf32>
    %cst_14 = arith.constant 1.600000e+01 : f32
    %34 = vector.broadcast %cst_14 : f32 to vector<2x32xf32>
    %35 = arith.divf %33, %34 : vector<2x32xf32>
    %c0_15 = arith.constant 0 : index
    %c0_16 = arith.constant 0 : index
    %c0_17 = arith.constant 0 : index
    %36 = vector.load %arg6[%c0_15, %c0_16, %c0_17] : memref<2x32x32xf32, #tpu.memory_space<vmem>>, vector<1x32x32xf32>
    %37 = vector.shape_cast %36 : vector<1x32x32xf32> to vector<32x32xf32>
    %cst_18 = arith.constant dense<0.000000e+00> : vector<2x32xf32>
    %38 = tpu.matmul %35, %37, %cst_18 {dimension_numbers = #tpu.dot_dimension_numbers<[1], [0], [0], [1], [0, 0, 1, 1], [], []>} : vector<2x32xf32>, vector<32x32xf32>, vector<2x32xf32> -> vector<2x32xf32>
    %cst_19 = arith.constant 0.000000e+00 : f32
    %39 = vector.broadcast %cst_19 : f32 to vector<2x32xf32>
    %40 = arith.maximumf %38, %39 : vector<2x32xf32>
    %c1_20 = arith.constant 1 : index
    %c0_21 = arith.constant 0 : index
    %c0_22 = arith.constant 0 : index
    %41 = vector.load %arg6[%c1_20, %c0_21, %c0_22] : memref<2x32x32xf32, #tpu.memory_space<vmem>>, vector<1x32x32xf32>
    %42 = vector.shape_cast %41 : vector<1x32x32xf32> to vector<32x32xf32>
    %cst_23 = arith.constant dense<0.000000e+00> : vector<2x32xf32>
    %43 = tpu.matmul %40, %42, %cst_23 {dimension_numbers = #tpu.dot_dimension_numbers<[1], [0], [0], [1], [0, 0, 1, 1], [], []>} : vector<2x32xf32>, vector<32x32xf32>, vector<2x32xf32> -> vector<2x32xf32>
    %44 = arith.negf %43 : vector<2x32xf32>
    %45 = math.exp %44 : vector<2x32xf32>
    %cst_24 = arith.constant 1.000000e+00 : f32
    %46 = vector.broadcast %cst_24 : f32 to vector<2x32xf32>
    %47 = arith.addf %46, %45 : vector<2x32xf32>
    %48 = arith.divf %46, %47 : vector<2x32xf32>
    %49 = tpu.concatenate %48, %48, %48, %48, %48, %48, %48, %48, %48, %48, %48, %48, %48, %48, %48, %48 in 1 : vector<2x32xf32>, vector<2x32xf32>, vector<2x32xf32>, vector<2x32xf32>, vector<2x32xf32>, vector<2x32xf32>, vector<2x32xf32>, vector<2x32xf32>, vector<2x32xf32>, vector<2x32xf32>, vector<2x32xf32>, vector<2x32xf32>, vector<2x32xf32>, vector<2x32xf32>, vector<2x32xf32>, vector<2x32xf32> -> vector<2x512xf32>
    %c0_25 = arith.constant 0 : index
    %c0_26 = arith.constant 0 : index
    %50 = vector.load %arg7[%c0_25, %c0_26] : memref<2x512xf32, #tpu.memory_space<vmem>>, vector<2x512xf32>
    tpu.vector_store %arg7[%c0_25, %c0_26], %49 {strides = array<i32>} : memref<2x512xf32, #tpu.memory_space<vmem>>, vector<2x512xf32>,
    return
  }
  func.func @transform_0(%arg0: i32) -> (i32, i32) {
    %c0_i32 = arith.constant 0 : i32
    %c0_i32_0 = arith.constant 0 : i32
    return %arg0, %c0_i32 : i32, i32
  }
  func.func @transform_1(%arg0: i32) -> (i32, i32) {
    %c0_i32 = arith.constant 0 : i32
    %c0_i32_0 = arith.constant 0 : i32
    %c0_i32_1 = arith.constant 0 : i32
    return %c0_i32, %c0_i32_0 : i32, i32
  }
  func.func @transform_2(%arg0: i32) -> (i32, i32) {
    %c0_i32 = arith.constant 0 : i32
    %c0_i32_0 = arith.constant 0 : i32
    %c0_i32_1 = arith.constant 0 : i32
    return %c0_i32, %c0_i32_0 : i32, i32
  }
  func.func @transform_3(%arg0: i32) -> (i32, i32) {
    %c0_i32 = arith.constant 0 : i32
    %c0_i32_0 = arith.constant 0 : i32
    %c0_i32_1 = arith.constant 0 : i32
    return %c0_i32, %c0_i32_0 : i32, i32
  }
  func.func @transform_4(%arg0: i32) -> (i32, i32) {
    %c0_i32 = arith.constant 0 : i32
    %c0_i32_0 = arith.constant 0 : i32
    %c0_i32_1 = arith.constant 0 : i32
    return %c0_i32, %c0_i32_0 : i32, i32
  }
  func.func @transform_5(%arg0: i32) -> (i32, i32, i32) {
    %c0_i32 = arith.constant 0 : i32
    %c0_i32_0 = arith.constant 0 : i32
    %c0_i32_1 = arith.constant 0 : i32
    %c0_i32_2 = arith.constant 0 : i32
    return %c0_i32, %c0_i32_0, %c0_i32_1 : i32, i32, i32
  }
  func.func @transform_6(%arg0: i32) -> (i32, i32) {
    %c0_i32 = arith.constant 0 : i32
    %c0_i32_0 = arith.constant 0 : i32
    return %arg0, %c0_i32 : i32, i32
  }
}

</mosaic_0001>

<bundles_post_ra>
// kernel: encoder_forward.1
= control target key start
LH: loop header
LB: loop body
LE: loop exit
PB: predicated region body
PF: predicated region fallthrough
CT: control target
= control target key end

     0   :  { %v690_v0 = vmov 0   ;;  %v691_v2 = vmov 2   ;;  %v692_v9 = vmov 1   ;;  %v102_v19 = vlaneseq  ;;  %s696_s30 = smov 64   ;;  %s820_s0 = inlined_call_operand.vmem [shape: f32[32,3], index: 0, kind: input, shape index: {}]   ;;  %s821_s3 = inlined_call_operand.vmem [shape: f32[8,32], index: 3, kind: input, shape index: {}]   ;;  %s822_s2 = inlined_call_operand.vmem [shape: f32[16,32], index: 2, kind: input, shape index: {}]   ;;  %s823_s1 = inlined_call_operand.vmem [shape: f32[3,16], index: 1, kind: input, shape index: {}]   ;;  %s824_s5 = inlined_call_operand.vmem [shape: f32[2,32,32], index: 5, kind: input, shape index: {}]   ;;  %s825_s4 = inlined_call_operand.vmem [shape: f32[1,32], index: 4, kind: input, shape index: {}]   ;;  %s826_s6 = inlined_call_operand.vmem [shape: f32[2,512], index: 6, kind: output, shape index: {}]  }
   0x1   :  { %678 = vset.pattern.permute.xlu1 %v690_v0  ;;  %v23_v1 = vld [vmem:[%s820_s0] sm:$0xff]  ;;  %680 = vset.pattern.permute.xlu0 %v691_v2  ;;  %v24_v3 = vld [vmem:[%s820_s0 + $0x8] sm:$0xff]  ;;  %v26_v6 = vld [vmem:[%s820_s0 + $0x18] sm:$0xff]  ;;  %vm131_vm0 = vcmask 64512   ;;  %v693_v27 = vmov 0.0   ;;  %vm229_vm5 = vcmask 130048  }
   0x2   :  { %36 = vperm.xlu1 %678, %v23_v1   ;;  %v660_v4 = vtrunc.f32 %v23_v1  ;;  %v662_v5 = vtrunc.f32 %v24_v3  ;;  %v25_v8 = vld [vmem:[%s820_s0 + $0x10] sm:$0xff]  ;;  %v666_v11 = vtrunc.f32 %v26_v6  ;;  %v130_v15 = vld [vmem:[%s821_s3] sm:$0xff]  ;;  %v129_v17 = vld [vmem:[%s822_s2 + $0x8] sm:$0xff]  ;;  %v103_v21 = vand.u32 127, %v102_v19  ;;  %s697_s0 = smov 32  }
   0x3   :  { %v664_v12 = vtrunc.f32 %v25_v8  ;;  %600 = vmatprep.subr.mxu0 %v130_v15  ;;  %v128_v16 = vld [vmem:[%s822_s2] sm:$0xff]  ;;  %v361_v62 = vld [vmem:[%s824_s5 + $0x8] sm:$0xff]  ;;  %vm695_vm6 = vmmov 0   ;;  %vm338_vm7 = vcmask 261120   ;;  %vm366_vm8 = vcmask 1041409  }
   0x4   :  { %v661_v7 = vcvt.f32.s32 %v660_v4  ;;  %v663_v10 = vcvt.f32.s32 %v662_v5  ;;  %v667_v13 = vcvt.f32.s32 %v666_v11  ;;  %601 = vmatpush3.msra.mxu0 %v130_v15  ;;  %v640_v18 = vpack.c.bf16 %v129_v17, %v128_v16  ;;  %v557_v22 = vld [vmem:[%s823_s1 + $0x1] ss:$0 sm:$0xff]  ;;  %v556_v23 = vld [vmem:[%s823_s1] ss:$0 sm:$0xff]  ;;  %v558_v33 = vld [vmem:[%s823_s1 + $0x2] ss:$0 sm:$0xff]  ;;  %626 = vmatprep.mubr.msk.f32.mxu1 %vm695_vm6, %v693_v27 }
   0x5   :  { %v665_v14 = vcvt.f32.s32 %v664_v12  ;;  %v360_v61 = vld [vmem:[%s824_s5] sm:$0xff]  ;;  %vm536_vm9 = vcmask 523264   ;;  %vm538_vm10 = vcmask 785408  }
   0x6   :  { %679 = vset.pattern.permute.xlu1 %v692_v9  ;;  %105 = vperm.xlu0 %680, %v661_v7   ;;  %v645_v63 = vpack.c.bf16 %v361_v62, %v360_v61  ;;  %v571_v4 = vld [vmem:[%s825_s4] ss:$0 sm:$0xff] }
   0x7   :  { %63 = vperm.xlu1 %679, %v23_v1   ;;  %641 = vmatprep.subr.bf16.mxu0 %v640_v18  ;;  %v362_v1 = vld [vmem:[%s824_s5 + $0x10] sm:$0xff] }
   0xa   :  { %108 = vperm.xlu0 %680, %v663_v10  }
   0xb   :  { %67 = vperm.xlu1 %679, %v24_v3  }
   0xe   :  { %114 = vperm.xlu0 %680, %v667_v13  }
   0xf   :  { %681 = vset.pattern.permute.xlu1 %v691_v2 }
  0x10   :  { %111 = vperm.xlu1 %681, %v665_v14  }
  0x12   :  { %682 = vset.pattern.permute.xlu0 %v690_v0 }
  0x13   :  { %41 = vperm.xlu0 %682, %v24_v3  }
  0x14   :  { %683 = vset.pattern.permute.xlu1 %v690_v0  ;;  %v694_v0 = vmov 0.0|0.0  }
  0x15   :  { %46 = vperm.xlu1 %683, %v25_v8   ;;  %644 = vmatprep.subr.bf16.mxu1 %v694_v0 }
  0x16   :  { %646 = vmatpush3.bf16.msra.mxu1 %v645_v63 }
  0x17   :  { %51 = vperm.xlu0 %682, %v26_v6   ;;  %647 = vmatprep.subr.bf16.mxu1 %v694_v0 }
  0x19   :  { %684 = vset.pattern.permute.xlu1 %v692_v9 }
  0x1a   :  { %71 = vperm.xlu1 %684, %v25_v8  }
  0x1b   :  { %685 = vset.pattern.permute.xlu0 %v691_v2  ;;  %v363_v2 = vld [vmem:[%s824_s5 + $0x18] sm:$0xff] }
  0x1c   :  { %v648_v3 = vpack.c.bf16 %v363_v2, %v362_v1 }
  0x1e   :  { %75 = vperm.xlu1 %684, %v26_v6   ;;  %649 = vmatpush3.bf16.msra.mxu1 %v648_v3 }
  0x1f   :  { %650 = vmatprep.subr.bf16.mxu1 %v694_v0 }
  0x81   :  { %v37_v20 = vpop.permute.xlu1 %36 }
  0x82   :  { %v58_v29 = vmul.f32 %v556_v23, %v37_v20 }
  0x85   :  { %v106_v24 = vpop.permute.xlu0 %105 }
  0x86   :  { %vm116_vm1 = vcmp.eq.s32.totalorder %v106_v24, %v103_v21  ;;  %v64_v25 = vpop.permute.xlu1 %63 }
  0x87   :  { %v82_v26 = vmul.f32 %v557_v22, %v64_v25  ;;  %v559_v28 = vsel %vm116_vm1, 1.0, %v693_v27 }
  0x88   :  { %602 = vmatprep.mubr.msk.f32.mxu0 %vm131_vm0, %v559_v28 }
  0x89   :  { %v109_v30 = vpop.permute.xlu0 %108  ;;  %v86_v31 = vadd.f32 %v82_v26, %v58_v29 }
  0x8a   :  { %vm117_vm2 = vcmp.eq.s32.totalorder %v109_v30, %v103_v21  ;;  %v68_v32 = vpop.permute.xlu1 %67 }
  0x8b   :  { %v560_v34 = vsel %vm117_vm2, 1.0, %v693_v27  ;;  %v94_v36 = vadd.f32 %v558_v33, %v86_v31  ;;  %v83_v42 = vmul.f32 %v557_v22, %v68_v32  ;;  %v573_v32 = vld [vmem:[%s824_s5 + $0x20] sm:$0xff] }
  0x8c   :  { %603 = vmatmul.mubr.msk.f32.vlgmr.msra.gmra.mrb[0].mxu0 %vm131_vm0, %v560_v34 }
  0x8d   :  { %v115_v35 = vpop.permute.xlu0 %114  ;;  %643 = vmatpush3.bf16.msra.mxu0 %v640_v18  ;;  %v98_v39 = vmax.f32 %v94_v36, 0.0 }
  0x8e   :  { %vm119_vm3 = vcmp.eq.s32.totalorder %v115_v35, %v103_v21 }
  0x8f   :  { %v112_v37 = vpop.permute.xlu1 %111  ;;  %v562_v40 = vsel %vm119_vm3, 1.0, %v693_v27 }
  0x90   :  { %vm118_vm4 = vcmp.eq.s32.totalorder %v112_v37, %v103_v21 }
  0x91   :  { %v561_v38 = vsel %vm118_vm4, 1.0, %v693_v27 }
  0x92   :  { %605 = vmatprep.mubr.msk.f32.mxu0 %vm131_vm0, %v561_v38  ;;  %v42_v41 = vpop.permute.xlu0 %41 }
  0x93   :  { %v59_v43 = vmul.f32 %v556_v23, %v42_v41  ;;  %606 = vmatmul.mubr.msk.f32.gmra.mrb[2].mxu0 %vm131_vm0, %v562_v40  ;;  %v576_v40 = vld [vmem:[%s824_s5 + $0x38] sm:$0xff] }
  0x94   :  { %v47_v44 = vpop.permute.xlu1 %46  ;;  %612 = vmatprep.mubr.msk.f32.mxu0 %vm229_vm5, %v98_v39  ;;  %v575_v39 = vld [vmem:[%s824_s5 + $0x30] sm:$0xff] }
  0x95   :  { %v87_v45 = vadd.f32 %v83_v42, %v59_v43  ;;  %v60_v49 = vmul.f32 %v556_v23, %v47_v44  ;;  %v654_v41 = vpack.c.bf16 %v576_v40, %v575_v39 }
  0x96   :  { %v52_v51 = vpop.permute.xlu0 %51 }
  0x97   :  { %v95_v46 = vadd.f32 %v558_v33, %v87_v45  ;;  %v61_v55 = vmul.f32 %v556_v23, %v52_v51 }
  0x99   :  { %v99_v47 = vmax.f32 %v95_v46, 0.0  ;;  %v72_v48 = vpop.permute.xlu1 %71 }
  0x9a   :  { %v84_v50 = vmul.f32 %v557_v22, %v72_v48 }
  0x9b   :  { %613 = vmatmul.mubr.msk.f32.vlgmr.msra.gmra.mrb[0].mxu0 %vm229_vm5, %v99_v47 }
  0x9c   :  { %v88_v52 = vadd.f32 %v84_v50, %v60_v49  ;;  %v699_v50 = vmov 1983009808  }
  0x9d   :  { %v76_v53 = vpop.permute.xlu1 %75  ;;  %v543_v51 = vunpack.c.l.s4 %v699_v50 }
  0x9e   :  { %v96_v54 = vadd.f32 %v558_v33, %v88_v52  ;;  %v85_v56 = vmul.f32 %v557_v22, %v76_v53 }
  0x9f   :  { %v544_v53 = vunpack.c.0.s8 %v543_v51 }
  0xa0   :  { %v100_v57 = vmax.f32 %v96_v54, 0.0  ;;  %v89_v58 = vadd.f32 %v85_v56, %v61_v55  ;;  %v546_v54 = vshrl.u32 %v102_v19, 7 }
  0xa2   :  { %v97_v59 = vadd.f32 %v558_v33, %v89_v58  ;;  %615 = vmatprep.mubr.msk.f32.mxu0 %vm229_vm5, %v100_v57  ;;  %v574_v33 = vld [vmem:[%s824_s5 + $0x28] sm:$0xff]  ;;  %s698_s5 = smov 96   ;;  %v547_v58 = vsub.s32 %v544_v53, %v546_v54 }
  0xa3   :  { %v651_v37 = vpack.c.bf16 %v574_v33, %v573_v32 }
  0xa4   :  { %v101_v60 = vmax.f32 %v97_v59, 0.0 }
  0xa6   :  { %616 = vmatmul.mubr.msk.f32.gmra.mrb[2].mxu0 %vm229_vm5, %v101_v60 }
 0x16e   :  { %v614_v5 = vpop.f32.mrb[0].mxu0 }
 0x16f   :  { %v335_v6 = vadd.f32 %v614_v5, %v571_v4  ;;  %v308_v7 = vpop.f32.mrb[1].mxu0 }
 0x170   :  { %v334_v8 = vadd.f32 %v571_v4, %v308_v7 }
 0x171   :  { %v340_v9 = vsel %vm338_vm7, %v335_v6, 0.0 }
 0x172   :  { %v339_v10 = vsel %vm338_vm7, %v334_v8, 0.0 }
 0x173   :  { %v341_v11 = vadd.f32 %v340_v9, %v339_v10 }
 0x175   :  { %v342_v12 = vrot.slane %v341_v11, 4 }
 0x177   :  { %v343_v13 = vadd.f32 %v342_v12, %v341_v11 }
 0x179   :  { %v617_v14 = vpop.f32.mrb[2].mxu0  ;;  %v344_v18 = vrot.slane %v343_v13, 2 }
 0x17a   :  { %v337_v15 = vadd.f32 %v617_v14, %v571_v4  ;;  %v318_v16 = vpop.f32.mrb[3].mxu0 }
 0x17b   :  { %v336_v17 = vadd.f32 %v571_v4, %v318_v16  ;;  %v345_v23 = vadd.f32 %v344_v18, %v343_v13 }
 0x17c   :  { %v349_v20 = vsel %vm338_vm7, %v337_v15, 0.0 }
 0x17d   :  { %v348_v21 = vsel %vm338_vm7, %v336_v17, 0.0  ;;  %v346_v26 = vrot.slane %v345_v23, 1 }
 0x17e   :  { %v350_v22 = vadd.f32 %v349_v20, %v348_v21 }
 0x17f   :  { %v347_v31 = vadd.f32 %v346_v26, %v345_v23 }
 0x180   :  { %v351_v24 = vrot.slane %v350_v22, 4 }
 0x181   :  { %v358_v35 = vmul.f32 0.0625, %v347_v31 }
 0x182   :  { %v352_v25 = vadd.f32 %v351_v24, %v350_v22 }
 0x184   :  { %v353_v28 = vrot.slane %v352_v25, 2 }
 0x186   :  { %v354_v29 = vadd.f32 %v353_v28, %v352_v25 }
 0x188   :  { %v355_v30 = vrot.slane %v354_v29, 1 }
 0x18a   :  { %v356_v34 = vadd.f32 %v355_v30, %v354_v29 }
 0x18c   :  { %v359_v36 = vmul.f32 0.0625, %v356_v34 }
 0x18e   :  { %v367_v38 = vsel %vm366_vm8, %v359_v36, %v358_v35 }
 0x18f   :  { %627 = vmatmul.mubr.msk.f32.vlgmr.msra.gmra.mrb[0].mxu1 %vm338_vm7, %v367_v38 }
 0x190   :  { %652 = vmatpush3.bf16.msra.mxu1 %v651_v37  ;;  %637 = vmatprep.mubr.msk.f32.mxu1 %vm695_vm6, %v693_v27 }
 0x191   :  { %653 = vmatprep.subr.bf16.mxu1 %v694_v0 }
 0x194   :  { %655 = vmatpush3.bf16.msra.mxu1 %v654_v41 }
 0x262   :  { %v436_v42 = vpop.f32.mrb[0].mxu1 }
 0x263   :  { %v440_v43 = vmax.f32 %v436_v42, 0.0  ;;  %v628_v44 = vpop.f32.mrb[1].mxu1 }
 0x265   :  { %638 = vmatmul.mubr.msk.f32.vlgmr.msra.gmra.mrb[2].mxu1 %vm338_vm7, %v440_v43 }
 0x338   :  { %v515_v45 = vpop.f32.mrb[2].mxu1 }
 0x339   :  { %v578_v46 = vmul.f32 -1.442695, %v515_v45  ;;  %v639_v47 = vpop.f32.mrb[3].mxu1 }
 0x33b   :  { %686 = vpow2.f32 %v578_v46 }
 0x345   :  { %v687_v27 = vpop.eup %686 }
 0x346   :  { %v522_v48 = vadd.f32 1.0, %v687_v27 }
 0x348   :  { %688 = vrcp.f32 %v522_v48 }
 0x352   :  { %v689_v49 = vpop.eup %688 }
 0x353   :  { %529 = vrot.lane.b32.xlu0 %v689_v49, %s696_s30  ;;  %526 = vrot.lane.b32.xlu1 %v689_v49, %s697_s0 }
 0x357   :  { %532 = vrot.lane.b32.xlu1 %v689_v49, %s698_s5 }
 0x3c5   :  { %v527_v52 = vpop.permute.xlu1 %526  ;;  %v530_v55 = vpop.permute.xlu0 %529 }
 0x3c6   :  { %v535_v56 = vsel %vm338_vm7, %v689_v49, %v527_v52 }
 0x3c7   :  { %v537_v57 = vsel %vm536_vm9, %v535_v56, %v530_v55 }
 0x3c9   :  { %v533_v59 = vpop.permute.xlu1 %532 }
 0x3ca   :  { %v539_v60 = vsel %vm538_vm10, %v537_v57, %v533_v59 }
 0x3cb   :  { %v541_v61 = vcombine.low %v539_v60, %v539_v60 }
 0x3cd   :  { %v548_v62 = vrot.slane %v541_v61, %v547_v58 }
 0x3cf   :  { %v549_v63 = vcombine.low %v548_v62, %v548_v62 }
 0x3d1   :  { %551 = vst [vmem:[%s826_s6] sm:$0xff] %v549_v63 }

</bundles_post_ra>
